<compile_context>
chip_gen: v7x
topology: tpu7x:2x2x1
jax: 0.10.0
libtpu: 0.0.40
codegen_flags: <defaults>
</compile_context>

<pallas_src>
from itertools import permutations

import jax
import jax.numpy as jnp
import numpy as np
from jax.experimental import pallas as pl
from jax.experimental.pallas import tpu as pltpu

_PI = float(np.pi)
_TWO_PI = 2.0 * _PI
_INV_TWO_PI = 1.0 / _TWO_PI

_MAX_TILE_B = 8192  # lanes per grid step; m * 8192 * 4B * 2 inputs * 2 bufs << VMEM on v5e/v6e/v7x


def _round_up(x: int, mult: int) -> int:
    return ((x + mult - 1) // mult) * mult


def _make_rmspe_kernel(m: int, perms, scale: float):
    """Build the kernel body. Everything closed over is a Python scalar/tuple."""

    def kernel(pred_ref, targ_ref, out_ref):
        pred = pred_ref[...]  # (m, TILE_B) f32, batch on lanes
        targ = targ_ref[...]  # (m, TILE_B) f32

        # Pairwise wrapped squared differences, computed once (M^2 wraps
        # instead of M! * M).  d2[i][j] = wrap(pred_i - targ_j)^2, (1, TILE_B).
        d2 = [[None] * m for _ in range(m)]
        for i in range(m):
            p_i = pred[i:i + 1, :]
            for j in range(m):
                d = p_i - targ[j:j + 1, :]
                w = d - _TWO_PI * jnp.floor((d + _PI) * _INV_TWO_PI)
                d2[i][j] = w * w

        # Min over permutations of the sum of squares (sqrt is monotone, so a
        # single sqrt after the min is exact).  Pure VALU adds + minimums.
        # TODO(synk): for M >= 6 drive this with lax.fori_loop over an SMEM
        # permutation table (scalar prefetch) instead of a full M! unroll.
        min_sq = None
        for perm in perms:
            s = d2[perm[0]][0]
            for t in range(1, m):
                s = s + d2[perm[t]][t]
            min_sq = s if min_sq is None else jnp.minimum(min_sq, s)

        # scale folds the 1/sqrt(m) of the RMS and the balance factor.
        out_ref[...] = jnp.sqrt(min_sq) * scale

    return kernel


def rmspe_loss(predictions, targets, balance_factor=None):
    """Pallas TPU implementation of RMSPELoss.forward.

    predictions, targets: (batch, M) angles in radians.
    Returns: (batch,) per-sample loss, matching the PyTorch module.
    """
    predictions = jnp.asarray(predictions, jnp.float32)
    targets = jnp.asarray(targets, jnp.float32)
    batch, m = predictions.shape

    if m == 1:
        # PyTorch module returns _periodic_mse directly (no balance factor).
        perms = [(0,)]
        bf = 1.0
    else:
        perms = list(permutations(range(m)))
        bf = float(balance_factor) if balance_factor is not None else 1.0 / float(np.sqrt(m))
    scale = bf / float(np.sqrt(m))  # compile-time constant, applied once

    # Batch on lanes: transpose to (m, batch) and pad batch to a lane-dense tile.
    tile_b = min(_MAX_TILE_B, _round_up(batch, 128))
    padded = _round_up(batch, tile_b)
    num_tiles = padded // tile_b

    pred_t = jnp.transpose(predictions)  # (m, batch)
    targ_t = jnp.transpose(targets)
    if padded != batch:
        pad = ((0, 0), (0, padded - batch))
        pred_t = jnp.pad(pred_t, pad)
        targ_t = jnp.pad(targ_t, pad)

    kernel = _make_rmspe_kernel(m, perms, scale)

    out = pl.pallas_call(
        kernel,
        out_shape=jax.ShapeDtypeStruct((1, padded), jnp.float32),
        grid=(num_tiles,),
        in_specs=[
            pl.BlockSpec((m, tile_b), lambda i: (0, i)),
            pl.BlockSpec((m, tile_b), lambda i: (0, i)),
        ],
        out_specs=pl.BlockSpec((1, tile_b), lambda i: (0, i)),
        compiler_params=pltpu.CompilerParams(
            dimension_semantics=("parallel",)),
    )(pred_t, targ_t)

    return out[0, :batch]


def _reference_rmspe(predictions, targets, balance_factor=None):
    # Pure-JAX reference mirroring the PyTorch module.
    predictions = jnp.asarray(predictions, jnp.float32)
    targets = jnp.asarray(targets, jnp.float32)
    batch, m = predictions.shape

    def periodic_mse(pred, targ):
        diff = pred - targ
        diff = jnp.arctan2(jnp.sin(diff), jnp.cos(diff))
        return jnp.sqrt(jnp.mean(diff ** 2, axis=1))

    if m == 1:
        return periodic_mse(predictions, targets)

    min_loss = jnp.full((batch,), jnp.inf, jnp.float32)
    for perm in permutations(range(m)):
        min_loss = jnp.minimum(min_loss, periodic_mse(predictions[:, list(perm)], targets))
    bf = float(balance_factor) if balance_factor is not None else 1.0 / float(np.sqrt(m))
    return min_loss * bf


if __name__ == "__main__":
    key = jax.random.PRNGKey(0)

    def _rand_angles(k, shape):
        return jax.random.uniform(k, shape, jnp.float32, minval=-np.pi, maxval=np.pi)

    # (batch, M, balance_factor) cases: default M=3 case, M=1 special case,
    # and a padded / explicit-balance-factor case.
    cases = [(2, 3, None), (7, 1, None), (300, 4, 2.5)]
    for batch, M, bf in cases:
        key, k1, k2 = jax.random.split(key, 3)
        predictions = _rand_angles(k1, (batch, M))
        targets = _rand_angles(k2, (batch, M))

        loss = jax.block_until_ready(rmspe_loss(predictions, targets, bf))
        ref = _reference_rmspe(predictions, targets, bf)
        np.testing.assert_allclose(np.asarray(loss), np.asarray(ref),
                                   rtol=1e-5, atol=1e-5)

    print("KERNEL_OK")
</pallas_src>

<mosaic_0001>
module attributes {stable_mosaic.version = 11 : i64} {
  func.func @kernel(%arg0: i32, %arg1: memref<3x128xf32, #tpu.memory_space<vmem>>, %arg2: memref<3x128xf32, #tpu.memory_space<vmem>>, %arg3: memref<1x128xf32, #tpu.memory_space<vmem>>) attributes {dimension_semantics = [#tpu.dimension_semantics<parallel>], iteration_bounds = array<i64: 1>, scalar_prefetch = 0 : i64, scratch_operands = 0 : i64, tpu.core_type = #tpu.core_type<tc>, window_params = [{transform_indices = @transform_0, window_bounds = array<i64: 3, 128>}, {transform_indices = @transform_1, window_bounds = array<i64: 3, 128>}, {transform_indices = @transform_2, window_bounds = array<i64: 1, 128>}]} {
    %c0 = arith.constant 0 : index
    %c0_0 = arith.constant 0 : index
    %0 = vector.load %arg1[%c0, %c0_0] : memref<3x128xf32, #tpu.memory_space<vmem>>, vector<3x128xf32>
    %c0_1 = arith.constant 0 : index
    %c0_2 = arith.constant 0 : index
    %1 = vector.load %arg2[%c0_1, %c0_2] : memref<3x128xf32, #tpu.memory_space<vmem>>, vector<3x128xf32>
    %2 = vector.extract_strided_slice %0 {offsets = [0, 0], sizes = [1, 128], strides = [1, 1]} : vector<3x128xf32> to vector<1x128xf32>
    %3 = vector.extract_strided_slice %1 {offsets = [0, 0], sizes = [1, 128], strides = [1, 1]} : vector<3x128xf32> to vector<1x128xf32>
    %4 = arith.subf %2, %3 : vector<1x128xf32>
    %cst = arith.constant 3.14159274 : f32
    %5 = vector.broadcast %cst : f32 to vector<1x128xf32>
    %6 = arith.addf %4, %5 : vector<1x128xf32>
    %cst_3 = arith.constant 0.159154937 : f32
    %7 = vector.broadcast %cst_3 : f32 to vector<1x128xf32>
    %8 = arith.mulf %6, %7 : vector<1x128xf32>
    %9 = math.floor %8 : vector<1x128xf32>
    %cst_4 = arith.constant 6.28318548 : f32
    %10 = vector.broadcast %cst_4 : f32 to vector<1x128xf32>
    %11 = arith.mulf %10, %9 : vector<1x128xf32>
    %12 = arith.subf %4, %11 : vector<1x128xf32>
    %13 = arith.mulf %12, %12 : vector<1x128xf32>
    %14 = vector.extract_strided_slice %1 {offsets = [1, 0], sizes = [1, 128], strides = [1, 1]} : vector<3x128xf32> to vector<1x128xf32>
    %15 = arith.subf %2, %14 : vector<1x128xf32>
    %cst_5 = arith.constant 3.14159274 : f32
    %16 = vector.broadcast %cst_5 : f32 to vector<1x128xf32>
    %17 = arith.addf %15, %16 : vector<1x128xf32>
    %cst_6 = arith.constant 0.159154937 : f32
    %18 = vector.broadcast %cst_6 : f32 to vector<1x128xf32>
    %19 = arith.mulf %17, %18 : vector<1x128xf32>
    %20 = math.floor %19 : vector<1x128xf32>
    %cst_7 = arith.constant 6.28318548 : f32
    %21 = vector.broadcast %cst_7 : f32 to vector<1x128xf32>
    %22 = arith.mulf %21, %20 : vector<1x128xf32>
    %23 = arith.subf %15, %22 : vector<1x128xf32>
    %24 = arith.mulf %23, %23 : vector<1x128xf32>
    %25 = vector.extract_strided_slice %1 {offsets = [2, 0], sizes = [1, 128], strides = [1, 1]} : vector<3x128xf32> to vector<1x128xf32>
    %26 = arith.subf %2, %25 : vector<1x128xf32>
    %cst_8 = arith.constant 3.14159274 : f32
    %27 = vector.broadcast %cst_8 : f32 to vector<1x128xf32>
    %28 = arith.addf %26, %27 : vector<1x128xf32>
    %cst_9 = arith.constant 0.159154937 : f32
    %29 = vector.broadcast %cst_9 : f32 to vector<1x128xf32>
    %30 = arith.mulf %28, %29 : vector<1x128xf32>
    %31 = math.floor %30 : vector<1x128xf32>
    %cst_10 = arith.constant 6.28318548 : f32
    %32 = vector.broadcast %cst_10 : f32 to vector<1x128xf32>
    %33 = arith.mulf %32, %31 : vector<1x128xf32>
    %34 = arith.subf %26, %33 : vector<1x128xf32>
    %35 = arith.mulf %34, %34 : vector<1x128xf32>
    %36 = vector.extract_strided_slice %0 {offsets = [1, 0], sizes = [1, 128], strides = [1, 1]} : vector<3x128xf32> to vector<1x128xf32>
    %37 = vector.extract_strided_slice %1 {offsets = [0, 0], sizes = [1, 128], strides = [1, 1]} : vector<3x128xf32> to vector<1x128xf32>
    %38 = arith.subf %36, %37 : vector<1x128xf32>
    %cst_11 = arith.constant 3.14159274 : f32
    %39 = vector.broadcast %cst_11 : f32 to vector<1x128xf32>
    %40 = arith.addf %38, %39 : vector<1x128xf32>
    %cst_12 = arith.constant 0.159154937 : f32
    %41 = vector.broadcast %cst_12 : f32 to vector<1x128xf32>
    %42 = arith.mulf %40, %41 : vector<1x128xf32>
    %43 = math.floor %42 : vector<1x128xf32>
    %cst_13 = arith.constant 6.28318548 : f32
    %44 = vector.broadcast %cst_13 : f32 to vector<1x128xf32>
    %45 = arith.mulf %44, %43 : vector<1x128xf32>
    %46 = arith.subf %38, %45 : vector<1x128xf32>
    %47 = arith.mulf %46, %46 : vector<1x128xf32>
    %48 = vector.extract_strided_slice %1 {offsets = [1, 0], sizes = [1, 128], strides = [1, 1]} : vector<3x128xf32> to vector<1x128xf32>
    %49 = arith.subf %36, %48 : vector<1x128xf32>
    %cst_14 = arith.constant 3.14159274 : f32
    %50 = vector.broadcast %cst_14 : f32 to vector<1x128xf32>
    %51 = arith.addf %49, %50 : vector<1x128xf32>
    %cst_15 = arith.constant 0.159154937 : f32
    %52 = vector.broadcast %cst_15 : f32 to vector<1x128xf32>
    %53 = arith.mulf %51, %52 : vector<1x128xf32>
    %54 = math.floor %53 : vector<1x128xf32>
    %cst_16 = arith.constant 6.28318548 : f32
    %55 = vector.broadcast %cst_16 : f32 to vector<1x128xf32>
    %56 = arith.mulf %55, %54 : vector<1x128xf32>
    %57 = arith.subf %49, %56 : vector<1x128xf32>
    %58 = arith.mulf %57, %57 : vector<1x128xf32>
    %59 = vector.extract_strided_slice %1 {offsets = [2, 0], sizes = [1, 128], strides = [1, 1]} : vector<3x128xf32> to vector<1x128xf32>
    %60 = arith.subf %36, %59 : vector<1x128xf32>
    %cst_17 = arith.constant 3.14159274 : f32
    %61 = vector.broadcast %cst_17 : f32 to vector<1x128xf32>
    %62 = arith.addf %60, %61 : vector<1x128xf32>
    %cst_18 = arith.constant 0.159154937 : f32
    %63 = vector.broadcast %cst_18 : f32 to vector<1x128xf32>
    %64 = arith.mulf %62, %63 : vector<1x128xf32>
    %65 = math.floor %64 : vector<1x128xf32>
    %cst_19 = arith.constant 6.28318548 : f32
    %66 = vector.broadcast %cst_19 : f32 to vector<1x128xf32>
    %67 = arith.mulf %66, %65 : vector<1x128xf32>
    %68 = arith.subf %60, %67 : vector<1x128xf32>
    %69 = arith.mulf %68, %68 : vector<1x128xf32>
    %70 = vector.extract_strided_slice %0 {offsets = [2, 0], sizes = [1, 128], strides = [1, 1]} : vector<3x128xf32> to vector<1x128xf32>
    %71 = vector.extract_strided_slice %1 {offsets = [0, 0], sizes = [1, 128], strides = [1, 1]} : vector<3x128xf32> to vector<1x128xf32>
    %72 = arith.subf %70, %71 : vector<1x128xf32>
    %cst_20 = arith.constant 3.14159274 : f32
    %73 = vector.broadcast %cst_20 : f32 to vector<1x128xf32>
    %74 = arith.addf %72, %73 : vector<1x128xf32>
    %cst_21 = arith.constant 0.159154937 : f32
    %75 = vector.broadcast %cst_21 : f32 to vector<1x128xf32>
    %76 = arith.mulf %74, %75 : vector<1x128xf32>
    %77 = math.floor %76 : vector<1x128xf32>
    %cst_22 = arith.constant 6.28318548 : f32
    %78 = vector.broadcast %cst_22 : f32 to vector<1x128xf32>
    %79 = arith.mulf %78, %77 : vector<1x128xf32>
    %80 = arith.subf %72, %79 : vector<1x128xf32>
    %81 = arith.mulf %80, %80 : vector<1x128xf32>
    %82 = vector.extract_strided_slice %1 {offsets = [1, 0], sizes = [1, 128], strides = [1, 1]} : vector<3x128xf32> to vector<1x128xf32>
    %83 = arith.subf %70, %82 : vector<1x128xf32>
    %cst_23 = arith.constant 3.14159274 : f32
    %84 = vector.broadcast %cst_23 : f32 to vector<1x128xf32>
    %85 = arith.addf %83, %84 : vector<1x128xf32>
    %cst_24 = arith.constant 0.159154937 : f32
    %86 = vector.broadcast %cst_24 : f32 to vector<1x128xf32>
    %87 = arith.mulf %85, %86 : vector<1x128xf32>
    %88 = math.floor %87 : vector<1x128xf32>
    %cst_25 = arith.constant 6.28318548 : f32
    %89 = vector.broadcast %cst_25 : f32 to vector<1x128xf32>
    %90 = arith.mulf %89, %88 : vector<1x128xf32>
    %91 = arith.subf %83, %90 : vector<1x128xf32>
    %92 = arith.mulf %91, %91 : vector<1x128xf32>
    %93 = vector.extract_strided_slice %1 {offsets = [2, 0], sizes = [1, 128], strides = [1, 1]} : vector<3x128xf32> to vector<1x128xf32>
    %94 = arith.subf %70, %93 : vector<1x128xf32>
    %cst_26 = arith.constant 3.14159274 : f32
    %95 = vector.broadcast %cst_26 : f32 to vector<1x128xf32>
    %96 = arith.addf %94, %95 : vector<1x128xf32>
    %cst_27 = arith.constant 0.159154937 : f32
    %97 = vector.broadcast %cst_27 : f32 to vector<1x128xf32>
    %98 = arith.mulf %96, %97 : vector<1x128xf32>
    %99 = math.floor %98 : vector<1x128xf32>
    %cst_28 = arith.constant 6.28318548 : f32
    %100 = vector.broadcast %cst_28 : f32 to vector<1x128xf32>
    %101 = arith.mulf %100, %99 : vector<1x128xf32>
    %102 = arith.subf %94, %101 : vector<1x128xf32>
    %103 = arith.mulf %102, %102 : vector<1x128xf32>
    %104 = arith.addf %13, %58 : vector<1x128xf32>
    %105 = arith.addf %104, %103 : vector<1x128xf32>
    %106 = arith.addf %13, %92 : vector<1x128xf32>
    %107 = arith.addf %106, %69 : vector<1x128xf32>
    %108 = arith.minimumf %105, %107 : vector<1x128xf32>
    %109 = arith.addf %47, %24 : vector<1x128xf32>
    %110 = arith.addf %109, %103 : vector<1x128xf32>
    %111 = arith.minimumf %108, %110 : vector<1x128xf32>
    %112 = arith.addf %47, %92 : vector<1x128xf32>
    %113 = arith.addf %112, %35 : vector<1x128xf32>
    %114 = arith.minimumf %111, %113 : vector<1x128xf32>
    %115 = arith.addf %81, %24 : vector<1x128xf32>
    %116 = arith.addf %115, %69 : vector<1x128xf32>
    %117 = arith.minimumf %114, %116 : vector<1x128xf32>
    %118 = arith.addf %81, %58 : vector<1x128xf32>
    %119 = arith.addf %118, %35 : vector<1x128xf32>
    %120 = arith.minimumf %117, %119 : vector<1x128xf32>
    %121 = math.sqrt %120 : vector<1x128xf32>
    %cst_29 = arith.constant 0.333333343 : f32
    %122 = vector.broadcast %cst_29 : f32 to vector<1x128xf32>
    %123 = arith.mulf %121, %122 : vector<1x128xf32>
    %c0_30 = arith.constant 0 : index
    %c0_31 = arith.constant 0 : index
    %124 = vector.load %arg3[%c0_30, %c0_31] : memref<1x128xf32, #tpu.memory_space<vmem>>, vector<1x128xf32>
    tpu.vector_store %arg3[%c0_30, %c0_31], %123 {strides = array<i32>} : memref<1x128xf32, #tpu.memory_space<vmem>>, vector<1x128xf32>,
    return
  }
  func.func @transform_0(%arg0: i32) -> (i32, i32) {
    %c0_i32 = arith.constant 0 : i32
    %c0_i32_0 = arith.constant 0 : i32
    return %c0_i32, %arg0 : i32, i32
  }
  func.func @transform_1(%arg0: i32) -> (i32, i32) {
    %c0_i32 = arith.constant 0 : i32
    %c0_i32_0 = arith.constant 0 : i32
    return %c0_i32, %arg0 : i32, i32
  }
  func.func @transform_2(%arg0: i32) -> (i32, i32) {
    %c0_i32 = arith.constant 0 : i32
    %c0_i32_0 = arith.constant 0 : i32
    return %c0_i32, %arg0 : i32, i32
  }
}

</mosaic_0001>

<bundles_post_ra>
// kernel: tpu_custom_call.1
= control target key start
LH: loop header
LB: loop body
LE: loop exit
PB: predicated region body
PF: predicated region fallthrough
CT: control target
= control target key end

     0   :  { %7 = vsyncpa [#allocation3], 0  ;;  %s291_s0 = inlined_call_operand.hbm [shape: f32[3,128], index: 0, kind: input, shape index: {}]   ;;  %s292_s1 = inlined_call_operand.hbm [shape: f32[3,128], index: 1, kind: input, shape index: {}]   ;;  %s293_s2 = inlined_call_operand.hbm [shape: f32[1,128], index: 2, kind: output, shape index: {}]  }
   0x1   :  { %8 = vsyncpa [#allocation6], 0 }
   0x2   :  { %9 = vsyncpa [#allocation4], 0  ;;  %s237_s9 = smov [#allocation2]   ;;  %s238_s11 = smov [#allocation5]  }
   0x3   :  { %s16_s10 = sshll.u32 %s237_s9, 4  ;;  %s26_s12 = sshll.u32 %s238_s11, 4  ;;  %s17_s10 = int_to_ptr.vmem [resolvable:$true] %s16_s10  ;;  %s27_s12 = int_to_ptr.vmem [resolvable:$true] %s26_s12 }
   0x4   :  { %s165_s15 = scalar_lea.hbm %s291_s0, 64 }
   0x5   :  { %p166_p0 = scmp.ne.s32.totalorder %s291_s0, %s165_s15  ;;  %p169_p1 = scmp.lt.u32.totalorder %s165_s15, %s291_s0 }
   0x7   :  { %p171_p2 = pnand %p169_p1, %p166_p0 }
   0x9   :  { %174 = shalt.err (!%p171_p2)
}
   0xa   :  { %s175_s20 = scalar_lea.vmem %s17_s10, 64  ;;  %p180_p4 = scmp.lt.s32.totalorder %s17_s10, %s17_s10 }
   0xb   :  { %p176_p3 = scmp.ne.s32.totalorder %s17_s10, %s175_s20  ;;  %p181_p5 = scmp.lt.s32.totalorder %s175_s20, %s175_s20 }
   0xd   :  { %p182_p6 = por %p181_p5, %p180_p4 }
   0xf   :  { %p183_p7 = pnand %p182_p6, %p176_p3 }
  0x11   :  { %186 = shalt.err (!%p183_p7)
}
  0x12   :  { %19 = dma.hbm_to_vmem [thread:$0]  %s291_s0, 64, %s17_s10, [#allocation3]  }
  0x13   :  { %s187_s25 = scalar_lea.hbm %s292_s1, 64 }
  0x14   :  { %p188_p8 = scmp.ne.s32.totalorder %s292_s1, %s187_s25  ;;  %p191_p9 = scmp.lt.u32.totalorder %s187_s25, %s292_s1 }
  0x16   :  { %p193_p10 = pnand %p191_p9, %p188_p8 }
  0x18   :  { %196 = shalt.err (!%p193_p10)
}
  0x19   :  { %s197_s30 = scalar_lea.vmem %s27_s12, 64  ;;  %p202_p12 = scmp.lt.s32.totalorder %s27_s12, %s27_s12 }
  0x1a   :  { %p198_p11 = scmp.ne.s32.totalorder %s27_s12, %s197_s30  ;;  %p203_p13 = scmp.lt.s32.totalorder %s197_s30, %s197_s30 }
  0x1c   :  { %p204_p0 = por %p203_p13, %p202_p12 }
  0x1e   :  { %p205_p1 = pnand %p204_p0, %p198_p11 }
  0x20   :  { %208 = shalt.err (!%p205_p1)
}
  0x21   :  { %29 = dma.hbm_to_vmem [thread:$0]  %s292_s1, 64, %s27_s12, [#allocation6]  }
  0x22   :  { %231 = dma.done.wait [#allocation3], 64  }
  0x23   :  { %232 = vsyncadd [#allocation3], 4294967232 }
  0x24   :  { %233 = dma.done.wait [#allocation6], 64  }
  0x25   :  { %234 = vsyncadd [#allocation6], 4294967232  ;;  %v36_v0 = vld [vmem:[#allocation2] sm:$0x7]  ;;  %v37_v1 = vld [vmem:[#allocation5] sm:$0x7] }
  0x26   :  { %v38_v2 = vsub.f32 %v36_v0, %v37_v1  ;;  %v46_v3 = vrot.slane %v37_v1, 1  ;;  %v64_v4 = vrot.slane %v37_v1, 7  ;;  %v55_v5 = vrot.slane %v37_v1, 2  ;;  %s239_s1 = smov [#allocation7]  }
  0x27   :  { %v73_v6 = vrot.slane %v37_v1, 6  ;;  %s150_s4 = sshll.u32 %s239_s1, 4  ;;  %s151_s4 = int_to_ptr.vmem [resolvable:$true] %s150_s4 }
  0x28   :  { %v39_v7 = vadd.f32 3.1415927, %v38_v2  ;;  %v48_v8 = vsub.f32 %v36_v0, %v46_v3  ;;  %v66_v9 = vsub.f32 %v36_v0, %v64_v4  ;;  %v57_v10 = vsub.f32 %v36_v0, %v55_v5  ;;  %s209_s5 = scalar_lea.vmem %s151_s4, 16  ;;  %s213_s6 = scalar_lea.vmem %s151_s4, 32 }
  0x29   :  { %v75_v11 = vsub.f32 %v36_v0, %v73_v6  ;;  %p210_p2 = scmp.ne.s32.totalorder %s151_s4, %s209_s5  ;;  %p214_p3 = scmp.lt.s32.totalorder %s151_s4, %s151_s4 }
  0x2a   :  { %v40_v12 = vmul.f32 0.15915494, %v39_v7  ;;  %v49_v13 = vadd.f32 3.1415927, %v48_v8  ;;  %v67_v14 = vadd.f32 3.1415927, %v66_v9  ;;  %p215_p4 = scmp.lt.s32.totalorder %s213_s6, %s209_s5 }
  0x2b   :  { %v58_v15 = vadd.f32 3.1415927, %v57_v10  ;;  %v76_v16 = vadd.f32 3.1415927, %v75_v11 }
  0x2c   :  { %v41_v17 = vfloor.f32 %v40_v12  ;;  %v50_v18 = vmul.f32 0.15915494, %v49_v13  ;;  %v68_v19 = vmul.f32 0.15915494, %v67_v14  ;;  %p216_p5 = por %p215_p4, %p214_p3 }
  0x2d   :  { %v59_v20 = vmul.f32 0.15915494, %v58_v15  ;;  %v77_v21 = vmul.f32 0.15915494, %v76_v16 }
  0x2e   :  { %v42_v22 = vmul.f32 6.2831855, %v41_v17  ;;  %v69_v23 = vfloor.f32 %v68_v19  ;;  %v51_v24 = vfloor.f32 %v50_v18  ;;  %p217_p6 = pnand %p216_p5, %p210_p2 }
  0x2f   :  { %v60_v25 = vfloor.f32 %v59_v20  ;;  %v78_v26 = vfloor.f32 %v77_v21 }
  0x30   :  { %v43_v27 = vsub.f32 %v38_v2, %v42_v22  ;;  %v70_v28 = vmul.f32 6.2831855, %v69_v23  ;;  %v52_v29 = vmul.f32 6.2831855, %v51_v24 }
  0x31   :  { %v61_v30 = vmul.f32 6.2831855, %v60_v25  ;;  %v79_v31 = vmul.f32 6.2831855, %v78_v26 }
  0x32   :  { %v44_v32 = vmul.f32 %v43_v27, %v43_v27  ;;  %v71_v33 = vsub.f32 %v66_v9, %v70_v28  ;;  %v53_v34 = vsub.f32 %v48_v8, %v52_v29 }
  0x33   :  { %v62_v35 = vsub.f32 %v57_v10, %v61_v30  ;;  %v80_v36 = vsub.f32 %v75_v11, %v79_v31 }
  0x34   :  { %v72_v37 = vmul.f32 %v71_v33, %v71_v33  ;;  %v54_v38 = vmul.f32 %v53_v34, %v53_v34  ;;  %v83_v39 = vrot.slane %v44_v32, 1  ;;  %v86_v40 = vrot.slane %v44_v32, 2 }
  0x35   :  { %v63_v41 = vmul.f32 %v62_v35, %v62_v35  ;;  %v81_v42 = vmul.f32 %v80_v36, %v80_v36  ;;  %v125_v43 = vrot.slane %v44_v32, 7 }
  0x36   :  { %v85_v44 = vadd.f32 %v83_v39, %v44_v32  ;;  %v90_v45 = vrot.slane %v72_v37, 2  ;;  %v94_v46 = vrot.slane %v54_v38, 1  ;;  %v98_v47 = vrot.slane %v54_v38, 7 }
  0x37   :  { %v106_v48 = vrot.slane %v72_v37, 1  ;;  %v110_v49 = vrot.slane %v63_v41, 7  ;;  %v117_v50 = vrot.slane %v54_v38, 6  ;;  %v127_v51 = vadd.f32 %v125_v43, %v81_v42 }
  0x38   :  { %v88_v52 = vadd.f32 %v86_v40, %v85_v44  ;;  %v92_v53 = vadd.f32 %v90_v45, %v44_v32  ;;  %v100_v54 = vadd.f32 %v98_v47, %v72_v37  ;;  %v128_v55 = vrot.slane %v63_v41, 6 }
  0x39   :  { %v108_v56 = vadd.f32 %v106_v48, %v72_v37  ;;  %v119_v57 = vadd.f32 %v117_v50, %v81_v42 }
  0x3a   :  { %v96_v58 = vadd.f32 %v94_v46, %v92_v53  ;;  %v101_v59 = vadd.f32 %v100_v54, %v83_v39  ;;  %v130_v0 = vadd.f32 %v128_v55, %v127_v51 }
  0x3b   :  { %v112_v60 = vadd.f32 %v110_v49, %v108_v56  ;;  %v120_v61 = vadd.f32 %v119_v57, %v98_v47 }
  0x3c   :  { %v97_v62 = vmin.f32 %v88_v52, %v96_v58  ;;  %v103_v63 = vrot.slane %v101_v59, 1  ;;  %v132_v5 = vrot.slane %v130_v0, 2 }
  0x3d   :  { %v114_v1 = vrot.slane %v112_v60, 1  ;;  %v122_v3 = vrot.slane %v120_v61, 2 }
  0x3e   :  { %v105_v2 = vmin.f32 %v97_v62, %v103_v63 }
  0x40   :  { %v116_v4 = vmin.f32 %v105_v2, %v114_v1 }
  0x42   :  { %v124_v6 = vmin.f32 %v116_v4, %v122_v3 }
  0x44   :  { %v134_v7 = vmin.f32 %v124_v6, %v132_v5 }
  0x46   :  { %163 = vrsqrt.f32 %v134_v7  ;;  %vm137_vm0 = vcmp.eq.f32.partialorder %v134_v7, inf  ;;  %v140_v9 = vand.u32 2147483648, %v134_v7  ;;  %vm139_vm1 = vcmp.eq.f32.partialorder %v134_v7, 0.0 }
  0x50   :  { %v164_v8 = vpop.eup %163 }
  0x51   :  { %v136_v10 = vmul.f32 %v164_v8, %v134_v7 }
  0x53   :  { %v138_v11 = vsel %vm137_vm0, %v134_v7, %v136_v10 }
  0x54   :  { %v141_v12 = vsel %vm139_vm1, %v140_v9, %v138_v11 }
  0x55   :  { %v142_v13 = vmul.f32 0.33333334, %v141_v12 }
  0x57   :  { %143 = vst [vmem:[#allocation7] sm:$0x1] %v142_v13 }
  0x58   :  { %220 = shalt.err (!%p217_p6)
}
  0x59   :  { %s221_s9 = scalar_lea.hbm %s293_s2, 16 }
  0x5a   :  { %p222_p7 = scmp.ne.s32.totalorder %s293_s2, %s221_s9  ;;  %p225_p8 = scmp.lt.u32.totalorder %s221_s9, %s293_s2 }
  0x5c   :  { %p227_p9 = pnand %p225_p8, %p222_p7 }
  0x5e   :  { %230 = shalt.err (!%p227_p9)
}
  0x5f   :  { %153 = dma.vmem_to_hbm [thread:$0]  %s151_s4, 16, %s293_s2, [#allocation4]  }
  0x60   :  { %235 = dma.done.wait [#allocation4], 16  }
  0x61   :  { %236 = vsyncadd [#allocation4], 4294967280 }
  0x62   :  { %157 = vsyncpa [#allocation3], 1 }
  0x63   :  { %158 = vsyncpa [#allocation6], 1 }
  0x64   :  { %159 = vsyncpa [#allocation4], 1 }

</bundles_post_ra>
